<compile_context>
chip_gen: v7x
topology: tpu7x:2x2x1
jax: 0.10.0
libtpu: 0.0.40
codegen_flags: <defaults>
</compile_context>

<pallas_src>
import math

import jax
import jax.numpy as jnp
from jax.experimental import pallas as pl
from jax.experimental.pallas import tpu as pltpu


def _round_up(x, m):
    return (x + m - 1) // m * m


def _linear_kernel(x_ref, w_ref, b_ref, o_ref):
    # x: (TM, D), w: (A_pad, D)  -> contract both on dim 1 (MXU handles the
    # transposed RHS natively); accumulate in f32, add bias, store full-width.
    acc = jax.lax.dot_general(
        x_ref[...], w_ref[...],
        dimension_numbers=(((1,), (1,)), ((), ())),
        preferred_element_type=jnp.float32,
    )
    o_ref[...] = (acc + b_ref[...]).astype(o_ref.dtype)


def mlp_forward(state, weight, bias, *, block_batch=256):
    """state: (B, D) f32; weight: (A, D) f32 (PyTorch layout); bias: (A,) f32."""
    B, D = state.shape
    A, Dw = weight.shape
    assert Dw == D, "weight feature dim must match state"

    # Lane/sublane-dense padding: A -> multiple of 128, B -> multiple of 8.
    A_pad = _round_up(max(A, 128), 128)
    TM = min(block_batch, _round_up(B, 8))
    B_pad = _round_up(B, TM)

    x = state
    if B_pad != B:
        x = jnp.pad(x, ((0, B_pad - B), (0, 0)))
    w = weight
    if A_pad != A:
        w = jnp.pad(w, ((0, A_pad - A), (0, 0)))
    b2d = jnp.pad(bias, (0, A_pad - A)).reshape(1, A_pad)

    n_tiles = B_pad // TM
    cost = pl.CostEstimate(
        flops=2 * B_pad * D * A_pad,
        transcendentals=0,
        bytes_accessed=4 * (B_pad * D + A_pad * D + A_pad + B_pad * A_pad),
    )

    out = pl.pallas_call(
        _linear_kernel,
        out_shape=jax.ShapeDtypeStruct((B_pad, A_pad), state.dtype),
        grid=(n_tiles,),
        in_specs=[
            pl.BlockSpec((TM, D), lambda i: (i, 0)),       # batch tile of x
            pl.BlockSpec((A_pad, D), lambda i: (0, 0)),    # weight, resident
            pl.BlockSpec((1, A_pad), lambda i: (0, 0)),    # bias, resident
        ],
        out_specs=pl.BlockSpec((TM, A_pad), lambda i: (i, 0)),
        compiler_params=pltpu.CompilerParams(
            dimension_semantics=("parallel",)),
        cost_estimate=cost,
    )(x, w, b2d)

    return out[:B, :A]


def init_params(key, n_actions=3, n_input=1296, n_added_input=0):
    in_features = n_input + n_added_input
    k_w, k_b = jax.random.split(key)
    # kaiming_normal_ (fan_in mode, leaky_relu default a=0 -> gain=sqrt(2))
    std = math.sqrt(2.0 / in_features)
    weight = std * jax.random.normal(k_w, (n_actions, in_features), jnp.float32)
    # PyTorch Linear default bias init: U(-1/sqrt(fan_in), 1/sqrt(fan_in))
    bound = 1.0 / math.sqrt(in_features)
    bias = jax.random.uniform(k_b, (n_actions,), jnp.float32,
                              minval=-bound, maxval=bound)
    return weight, bias


if __name__ == "__main__":
    n_actions, n_input, n_added_input = 3, 1296, 0
    batch = 2

    key = jax.random.PRNGKey(0)
    k_params, k_state = jax.random.split(key)
    weight, bias = init_params(k_params, n_actions, n_input, n_added_input)
    state = jax.random.normal(k_state, (batch, n_input + n_added_input),
                              jnp.float32)

    q = mlp_forward(state, weight, bias)
    q = jax.block_until_ready(q)

    # Reference check against plain JAX (same math as nn.Linear forward).
    q_ref = state @ weight.T + bias
    assert q.shape == (batch, n_actions)
    assert jnp.allclose(q, q_ref, atol=1e-4, rtol=1e-4), "mismatch vs reference"

    # TODO(synk): pfrl.action_value.DiscreteActionValue is an RL wrapper object
    # (argmax/max helpers over q); it has no Pallas equivalent — we return raw q.
    print("KERNEL_OK")
</pallas_src>

<mosaic_0001>
module attributes {stable_mosaic.version = 11 : i64} {
  func.func @_linear_kernel(%arg0: i32, %arg1: memref<8x1296xf32, #tpu.memory_space<vmem>>, %arg2: memref<128x1296xf32, #tpu.memory_space<vmem>>, %arg3: memref<1x128xf32, #tpu.memory_space<vmem>>, %arg4: memref<8x128xf32, #tpu.memory_space<vmem>>) attributes {dimension_semantics = [#tpu.dimension_semantics<parallel>], iteration_bounds = array<i64: 1>, scalar_prefetch = 0 : i64, scratch_operands = 0 : i64, tpu.core_type = #tpu.core_type<tc>, window_params = [{transform_indices = @transform_0, window_bounds = array<i64: 8, 1296>}, {pipeline_mode = #tpu.pipeline_mode<synchronous>, transform_indices = @transform_1, window_bounds = array<i64: 128, 1296>}, {pipeline_mode = #tpu.pipeline_mode<synchronous>, transform_indices = @transform_2, window_bounds = array<i64: 1, 128>}, {transform_indices = @transform_3, window_bounds = array<i64: 8, 128>}]} {
    %c0 = arith.constant 0 : index
    %c0_0 = arith.constant 0 : index
    %0 = vector.load %arg1[%c0, %c0_0] : memref<8x1296xf32, #tpu.memory_space<vmem>>, vector<8x1296xf32>
    %c0_1 = arith.constant 0 : index
    %c0_2 = arith.constant 0 : index
    %1 = vector.load %arg2[%c0_1, %c0_2] : memref<128x1296xf32, #tpu.memory_space<vmem>>, vector<128x1296xf32>
    %cst = arith.constant dense<0.000000e+00> : vector<8x128xf32>
    %2 = tpu.matmul %0, %1, %cst {dimension_numbers = #tpu.dot_dimension_numbers<[1], [1], [0], [0], [0, 0, 1, 0], [], []>} : vector<8x1296xf32>, vector<128x1296xf32>, vector<8x128xf32> -> vector<8x128xf32>
    %c0_3 = arith.constant 0 : index
    %c0_4 = arith.constant 0 : index
    %3 = vector.load %arg3[%c0_3, %c0_4] : memref<1x128xf32, #tpu.memory_space<vmem>>, vector<1x128xf32>
    %4 = vector.broadcast %3 : vector<1x128xf32> to vector<8x128xf32>
    %5 = arith.addf %2, %4 : vector<8x128xf32>
    %c0_5 = arith.constant 0 : index
    %c0_6 = arith.constant 0 : index
    %6 = vector.load %arg4[%c0_5, %c0_6] : memref<8x128xf32, #tpu.memory_space<vmem>>, vector<8x128xf32>
    tpu.vector_store %arg4[%c0_5, %c0_6], %5 {strides = array<i32>} : memref<8x128xf32, #tpu.memory_space<vmem>>, vector<8x128xf32>,
    return
  }
  func.func @transform_0(%arg0: i32) -> (i32, i32) {
    %c0_i32 = arith.constant 0 : i32
    %c0_i32_0 = arith.constant 0 : i32
    return %arg0, %c0_i32 : i32, i32
  }
  func.func @transform_1(%arg0: i32) -> (i32, i32) {
    %c0_i32 = arith.constant 0 : i32
    %c0_i32_0 = arith.constant 0 : i32
    %c0_i32_1 = arith.constant 0 : i32
    return %c0_i32, %c0_i32_0 : i32, i32
  }
  func.func @transform_2(%arg0: i32) -> (i32, i32) {
    %c0_i32 = arith.constant 0 : i32
    %c0_i32_0 = arith.constant 0 : i32
    %c0_i32_1 = arith.constant 0 : i32
    return %c0_i32, %c0_i32_0 : i32, i32
  }
  func.func @transform_3(%arg0: i32) -> (i32, i32) {
    %c0_i32 = arith.constant 0 : i32
    %c0_i32_0 = arith.constant 0 : i32
    return %arg0, %c0_i32 : i32, i32
  }
}

</mosaic_0001>

<bundles_post_ra>
// kernel: tpu_custom_call.1
= control target key start
LH: loop header
LB: loop body
LE: loop exit
PB: predicated region body
PF: predicated region fallthrough
CT: control target
= control target key end

     0   :  { %s1627_s0 = inlined_call_operand.vmem [shape: f32[8,1296], index: 0, kind: input, shape index: {}]   ;;  %s1628_s1 = inlined_call_operand.vmem [shape: f32[128,1296], index: 1, kind: input, shape index: {}]   ;;  %s1629_s2 = inlined_call_operand.vmem [shape: f32[1,128], index: 2, kind: input, shape index: {}]   ;;  %s1630_s3 = inlined_call_operand.hbm [shape: f32[8,128], index: 3, kind: output, shape index: {}]  }
   0x1   :  { %v27_v0 = vld [vmem:[%s1628_s1 + $0x8] sm:$0xff]  ;;  %v38_v1 = vld [vmem:[%s1628_s1 + $0x60] sm:$0xff]  ;;  %v33_v2 = vld [vmem:[%s1628_s1 + $0x38] sm:$0xff] }
   0x2   :  { %v766_v3 = vpack.c.bf16 %v38_v1, %v27_v0  ;;  %v44_v4 = vld [vmem:[%s1628_s1 + $0x90] sm:$0xff]  ;;  %v26_v5 = vld [vmem:[%s1628_s1] sm:$0xff]  ;;  %v37_v6 = vld [vmem:[%s1628_s1 + $0x58] sm:$0xff] }
   0x3   :  { %v862_v7 = vpack.c.bf16 %v44_v4, %v33_v2  ;;  %v768_v8 = vpack.c.bf16 %v37_v6, %v26_v5  ;;  %v32_v9 = vld [vmem:[%s1628_s1 + $0x30] sm:$0xff]  ;;  %v43_v10 = vld [vmem:[%s1628_s1 + $0x88] sm:$0xff]  ;;  %v49_v11 = vld [vmem:[%s1628_s1 + $0xb8] sm:$0xff] }
   0x4   :  { %767 = vmatprep.subr.bf16.mxu1 %v766_v3  ;;  %v864_v12 = vpack.c.bf16 %v43_v10, %v32_v9  ;;  %v60_v13 = vld [vmem:[%s1628_s1 + $0x110] sm:$0xff]  ;;  %v55_v14 = vld [vmem:[%s1628_s1 + $0xe8] sm:$0xff]  ;;  %v66_v15 = vld [vmem:[%s1628_s1 + $0x140] sm:$0xff] }
   0x5   :  { %863 = vmatprep.subr.bf16.mxu0 %v862_v7  ;;  %769 = vmatpush1.bf16.xpose.msra.mxu1 %v768_v8  ;;  %v770_v16 = vpack.c.bf16 %v60_v13, %v49_v11  ;;  %v866_v17 = vpack.c.bf16 %v66_v15, %v55_v14  ;;  %v48_v18 = vld [vmem:[%s1628_s1 + $0xb0] sm:$0xff]  ;;  %v59_v19 = vld [vmem:[%s1628_s1 + $0x108] sm:$0xff]  ;;  %v54_v20 = vld [vmem:[%s1628_s1 + $0xe0] sm:$0xff] }
   0x6   :  { %865 = vmatpush1.bf16.xpose.msra.mxu0 %v864_v12  ;;  %v65_v21 = vld [vmem:[%s1628_s1 + $0x138] sm:$0xff]  ;;  %v71_v22 = vld [vmem:[%s1628_s1 + $0x168] sm:$0xff]  ;;  %v82_v23 = vld [vmem:[%s1628_s1 + $0x1c0] sm:$0xff]  ;;  %v772_v26 = vpack.c.bf16 %v59_v19, %v48_v18 }
   0x7   :  { %771 = vmatprep.subr.bf16.mxu1 %v770_v16  ;;  %867 = vmatprep.subr.bf16.mxu0 %v866_v17  ;;  %v77_v24 = vld [vmem:[%s1628_s1 + $0x198] sm:$0xff]  ;;  %v88_v25 = vld [vmem:[%s1628_s1 + $0x1f0] sm:$0xff]  ;;  %v868_v27 = vpack.c.bf16 %v65_v21, %v54_v20  ;;  %v774_v28 = vpack.c.bf16 %v82_v23, %v71_v22  ;;  %v70_v30 = vld [vmem:[%s1628_s1 + $0x160] sm:$0xff] }
   0x8   :  { %v870_v29 = vpack.c.bf16 %v88_v25, %v77_v24  ;;  %v81_v31 = vld [vmem:[%s1628_s1 + $0x1b8] sm:$0xff]  ;;  %v76_v32 = vld [vmem:[%s1628_s1 + $0x190] sm:$0xff]  ;;  %v87_v33 = vld [vmem:[%s1628_s1 + $0x1e8] sm:$0xff] }
   0x9   :  { %v93_v34 = vld [vmem:[%s1628_s1 + $0x218] sm:$0xff]  ;;  %v104_v35 = vld [vmem:[%s1628_s1 + $0x270] sm:$0xff]  ;;  %v99_v36 = vld [vmem:[%s1628_s1 + $0x248] sm:$0xff]  ;;  %v776_v38 = vpack.c.bf16 %v81_v31, %v70_v30  ;;  %v872_v39 = vpack.c.bf16 %v87_v33, %v76_v32 }
   0xa   :  { %v110_v37 = vld [vmem:[%s1628_s1 + $0x2a0] sm:$0xff]  ;;  %v778_v40 = vpack.c.bf16 %v104_v35, %v93_v34  ;;  %v92_v42 = vld [vmem:[%s1628_s1 + $0x210] sm:$0xff]  ;;  %v103_v43 = vld [vmem:[%s1628_s1 + $0x268] sm:$0xff] }
   0xb   :  { %v874_v41 = vpack.c.bf16 %v110_v37, %v99_v36  ;;  %v98_v44 = vld [vmem:[%s1628_s1 + $0x240] sm:$0xff]  ;;  %v109_v45 = vld [vmem:[%s1628_s1 + $0x298] sm:$0xff]  ;;  %v16_v46 = vld [vmem:[%s1627_s0 + $0x8] sm:$0xff]  ;;  %v780_v52 = vpack.c.bf16 %v103_v43, %v92_v42 }
   0xc   :  { %v115_v47 = vld [vmem:[%s1628_s1 + $0x2c8] sm:$0xff]  ;;  %v126_v48 = vld [vmem:[%s1628_s1 + $0x320] sm:$0xff]  ;;  %325 = vmatprep.mubr.f32.mxu1 %v16_v46  ;;  %v22_v49 = vld [vmem:[%s1627_s0 + $0x38] sm:$0xff]  ;;  %v876_v53 = vpack.c.bf16 %v109_v45, %v98_v44 }
   0xd   :  { %773 = vmatpush1.bf16.xpose.msra.mxu1 %v772_v26  ;;  %v121_v50 = vld [vmem:[%s1628_s1 + $0x2f8] sm:$0xff]  ;;  %v132_v51 = vld [vmem:[%s1628_s1 + $0x350] sm:$0xff]  ;;  %535 = vmatprep.mubr.f32.mxu0 %v22_v49  ;;  %v782_v54 = vpack.c.bf16 %v126_v48, %v115_v47  ;;  %v114_v56 = vld [vmem:[%s1628_s1 + $0x2c0] sm:$0xff] }
   0xe   :  { %869 = vmatpush1.bf16.xpose.msra.mxu0 %v868_v27  ;;  %775 = vmatprep.subr.bf16.mxu1 %v774_v28  ;;  %v878_v55 = vpack.c.bf16 %v132_v51, %v121_v50  ;;  %v125_v57 = vld [vmem:[%s1628_s1 + $0x318] sm:$0xff]  ;;  %v120_v58 = vld [vmem:[%s1628_s1 + $0x2f0] sm:$0xff]  ;;  %v131_v59 = vld [vmem:[%s1628_s1 + $0x348] sm:$0xff] }
   0xf   :  { %871 = vmatprep.subr.bf16.mxu0 %v870_v29  ;;  %v137_v60 = vld [vmem:[%s1628_s1 + $0x378] sm:$0xff]  ;;  %v148_v61 = vld [vmem:[%s1628_s1 + $0x3d0] sm:$0xff]  ;;  %v143_v62 = vld [vmem:[%s1628_s1 + $0x3a8] sm:$0xff]  ;;  %v784_v0 = vpack.c.bf16 %v125_v57, %v114_v56  ;;  %v880_v1 = vpack.c.bf16 %v131_v59, %v120_v58 }
  0x10   :  { %v154_v63 = vld [vmem:[%s1628_s1 + $0x400] sm:$0xff]  ;;  %v786_v2 = vpack.c.bf16 %v148_v61, %v137_v60  ;;  %v136_v4 = vld [vmem:[%s1628_s1 + $0x370] sm:$0xff]  ;;  %v147_v5 = vld [vmem:[%s1628_s1 + $0x3c8] sm:$0xff] }
  0x11   :  { %v882_v3 = vpack.c.bf16 %v154_v63, %v143_v62  ;;  %v142_v6 = vld [vmem:[%s1628_s1 + $0x3a0] sm:$0xff]  ;;  %v153_v7 = vld [vmem:[%s1628_s1 + $0x3f8] sm:$0xff]  ;;  %v159_v8 = vld [vmem:[%s1628_s1 + $0x428] sm:$0xff]  ;;  %v788_v12 = vpack.c.bf16 %v147_v5, %v136_v4 }
  0x12   :  { %v170_v9 = vld [vmem:[%s1628_s1 + $0x480] sm:$0xff]  ;;  %v165_v10 = vld [vmem:[%s1628_s1 + $0x458] sm:$0xff]  ;;  %v176_v11 = vld [vmem:[%s1628_s1 + $0x4b0] sm:$0xff]  ;;  %v884_v13 = vpack.c.bf16 %v153_v7, %v142_v6 }
  0x13   :  { %v790_v14 = vpack.c.bf16 %v170_v9, %v159_v8  ;;  %v886_v15 = vpack.c.bf16 %v176_v11, %v165_v10  ;;  %v158_v16 = vld [vmem:[%s1628_s1 + $0x420] sm:$0xff]  ;;  %v169_v17 = vld [vmem:[%s1628_s1 + $0x478] sm:$0xff]  ;;  %v164_v18 = vld [vmem:[%s1628_s1 + $0x450] sm:$0xff] }
  0x14   :  { %v175_v19 = vld [vmem:[%s1628_s1 + $0x4a8] sm:$0xff]  ;;  %v181_v20 = vld [vmem:[%s1628_s1 + $0x4d8] sm:$0xff]  ;;  %v192_v21 = vld [vmem:[%s1628_s1 + $0x530] sm:$0xff]  ;;  %v792_v24 = vpack.c.bf16 %v169_v17, %v158_v16 }
  0x15   :  { %777 = vmatpush1.bf16.xpose.msra.mxu1 %v776_v38  ;;  %v187_v22 = vld [vmem:[%s1628_s1 + $0x508] sm:$0xff]  ;;  %v198_v23 = vld [vmem:[%s1628_s1 + $0x560] sm:$0xff]  ;;  %v888_v25 = vpack.c.bf16 %v175_v19, %v164_v18  ;;  %v794_v26 = vpack.c.bf16 %v192_v21, %v181_v20  ;;  %v180_v28 = vld [vmem:[%s1628_s1 + $0x4d0] sm:$0xff] }
  0x16   :  { %873 = vmatpush1.bf16.xpose.msra.mxu0 %v872_v39  ;;  %779 = vmatprep.subr.bf16.mxu1 %v778_v40  ;;  %v890_v27 = vpack.c.bf16 %v198_v23, %v187_v22  ;;  %v191_v29 = vld [vmem:[%s1628_s1 + $0x528] sm:$0xff]  ;;  %v186_v30 = vld [vmem:[%s1628_s1 + $0x500] sm:$0xff]  ;;  %v197_v31 = vld [vmem:[%s1628_s1 + $0x558] sm:$0xff] }
  0x17   :  { %875 = vmatprep.subr.bf16.mxu0 %v874_v41  ;;  %v29_v32 = vld [vmem:[%s1628_s1 + $0x18] sm:$0xff]  ;;  %v40_v33 = vld [vmem:[%s1628_s1 + $0x70] sm:$0xff]  ;;  %v35_v34 = vld [vmem:[%s1628_s1 + $0x48] sm:$0xff]  ;;  %v796_v36 = vpack.c.bf16 %v191_v29, %v180_v28  ;;  %v892_v37 = vpack.c.bf16 %v197_v31, %v186_v30 }
  0x18   :  { %v46_v35 = vld [vmem:[%s1628_s1 + $0xa0] sm:$0xff]  ;;  %v798_v38 = vpack.c.bf16 %v40_v33, %v29_v32  ;;  %v28_v40 = vld [vmem:[%s1628_s1 + $0x10] sm:$0xff]  ;;  %v39_v41 = vld [vmem:[%s1628_s1 + $0x68] sm:$0xff] }
  0x19   :  { %v894_v39 = vpack.c.bf16 %v46_v35, %v35_v34  ;;  %v34_v42 = vld [vmem:[%s1628_s1 + $0x40] sm:$0xff]  ;;  %v45_v43 = vld [vmem:[%s1628_s1 + $0x98] sm:$0xff]  ;;  %v51_v44 = vld [vmem:[%s1628_s1 + $0xc8] sm:$0xff] }
  0x1a   :  { %v62_v45 = vld [vmem:[%s1628_s1 + $0x120] sm:$0xff] }
  0x1d   :  { %781 = vmatpush1.bf16.xpose.msra.mxu1 %v780_v52 }
  0x1e   :  { %877 = vmatpush1.bf16.xpose.msra.mxu0 %v876_v53  ;;  %783 = vmatprep.subr.bf16.mxu1 %v782_v54 }
  0x1f   :  { %879 = vmatprep.subr.bf16.mxu0 %v878_v55 }
  0x25   :  { %785 = vmatpush1.bf16.xpose.msra.mxu1 %v784_v0 }
  0x26   :  { %881 = vmatpush1.bf16.xpose.msra.mxu0 %v880_v1  ;;  %787 = vmatprep.subr.bf16.mxu1 %v786_v2 }
  0x27   :  { %883 = vmatprep.subr.bf16.mxu0 %v882_v3 }
  0x2d   :  { %789 = vmatpush1.bf16.xpose.msra.mxu1 %v788_v12 }
  0x2e   :  { %885 = vmatpush1.bf16.xpose.msra.mxu0 %v884_v13  ;;  %791 = vmatprep.subr.bf16.mxu1 %v790_v14 }
  0x2f   :  { %887 = vmatprep.subr.bf16.mxu0 %v886_v15 }
  0x35   :  { %793 = vmatpush1.bf16.xpose.msra.mxu1 %v792_v24 }
  0x36   :  { %889 = vmatpush1.bf16.xpose.msra.mxu0 %v888_v25  ;;  %795 = vmatprep.subr.bf16.mxu1 %v794_v26 }
  0x37   :  { %891 = vmatprep.subr.bf16.mxu0 %v890_v27 }
  0x3d   :  { %797 = vmatpush1.bf16.xpose.msra.mxu1 %v796_v36 }
  0x3e   :  { %893 = vmatpush1.bf16.xpose.msra.mxu0 %v892_v37  ;;  %799 = vmatprep.subr.bf16.mxu1 %v798_v38 }
  0x3f   :  { %895 = vmatprep.subr.bf16.mxu0 %v894_v39 }
  0x40   :  { %8 = vsyncpa [#allocation3], 0  ;;  %v57_v46 = vld [vmem:[%s1628_s1 + $0xf8] sm:$0xff]  ;;  %v68_v47 = vld [vmem:[%s1628_s1 + $0x150] sm:$0xff]  ;;  %v800_v49 = vpack.c.bf16 %v39_v41, %v28_v40  ;;  %v896_v51 = vpack.c.bf16 %v45_v43, %v34_v42  ;;  %v802_v52 = vpack.c.bf16 %v62_v45, %v51_v44  ;;  %vm209_vm0 = vcmask 130048  }
  0x41   :  { %v15_v48 = vld [vmem:[%s1627_s0] sm:$0xff]  ;;  %v21_v50 = vld [vmem:[%s1627_s0 + $0x30] sm:$0xff]  ;;  %v898_v53 = vpack.c.bf16 %v68_v47, %v57_v46  ;;  %v18_v54 = vld [vmem:[%s1627_s0 + $0x18] sm:$0xff]  ;;  %vm997_vm2 = vmmov 0  }
  0x42   :  { %v24_v55 = vld [vmem:[%s1627_s0 + $0x48] sm:$0xff]  ;;  %v50_v56 = vld [vmem:[%s1628_s1 + $0xc0] sm:$0xff]  ;;  %v61_v57 = vld [vmem:[%s1628_s1 + $0x118] sm:$0xff] }
  0x43   :  { %v56_v58 = vld [vmem:[%s1628_s1 + $0xf0] sm:$0xff]  ;;  %v67_v59 = vld [vmem:[%s1628_s1 + $0x148] sm:$0xff]  ;;  %v73_v60 = vld [vmem:[%s1628_s1 + $0x178] sm:$0xff]  ;;  %v804_v0 = vpack.c.bf16 %v61_v57, %v50_v56 }
  0x44   :  { %326 = vmatmul.mubr.f32.vlgmr.msra.gmra.mrb[0].mxu1 %v15_v48  ;;  %v84_v61 = vld [vmem:[%s1628_s1 + $0x1d0] sm:$0xff]  ;;  %v79_v62 = vld [vmem:[%s1628_s1 + $0x1a8] sm:$0xff]  ;;  %v90_v63 = vld [vmem:[%s1628_s1 + $0x200] sm:$0xff]  ;;  %v900_v1 = vpack.c.bf16 %v67_v59, %v56_v58 }
  0x45   :  { %801 = vmatpush1.bf16.xpose.msra.mxu1 %v800_v49  ;;  %536 = vmatmul.mubr.f32.vlgmr.msra.gmra.mrb[0].mxu0 %v21_v50  ;;  %v806_v2 = vpack.c.bf16 %v84_v61, %v73_v60  ;;  %v902_v3 = vpack.c.bf16 %v90_v63, %v79_v62  ;;  %v72_v4 = vld [vmem:[%s1628_s1 + $0x170] sm:$0xff]  ;;  %v83_v5 = vld [vmem:[%s1628_s1 + $0x1c8] sm:$0xff]  ;;  %v78_v6 = vld [vmem:[%s1628_s1 + $0x1a0] sm:$0xff] }
  0x46   :  { %897 = vmatpush1.bf16.xpose.msra.mxu0 %v896_v51  ;;  %803 = vmatprep.subr.bf16.mxu1 %v802_v52  ;;  %v89_v7 = vld [vmem:[%s1628_s1 + $0x1f8] sm:$0xff]  ;;  %v95_v8 = vld [vmem:[%s1628_s1 + $0x228] sm:$0xff]  ;;  %v106_v9 = vld [vmem:[%s1628_s1 + $0x280] sm:$0xff]  ;;  %v808_v12 = vpack.c.bf16 %v83_v5, %v72_v4 }
  0x47   :  { %899 = vmatprep.subr.bf16.mxu0 %v898_v53  ;;  %395 = vmatprep.mubr.f32.mxu1 %v18_v54  ;;  %v101_v10 = vld [vmem:[%s1628_s1 + $0x258] sm:$0xff]  ;;  %v112_v11 = vld [vmem:[%s1628_s1 + $0x2b0] sm:$0xff]  ;;  %v904_v13 = vpack.c.bf16 %v89_v7, %v78_v6  ;;  %v810_v14 = vpack.c.bf16 %v106_v9, %v95_v8  ;;  %v94_v16 = vld [vmem:[%s1628_s1 + $0x220] sm:$0xff] }
  0x48   :  { %605 = vmatprep.mubr.f32.mxu0 %v24_v55  ;;  %v906_v15 = vpack.c.bf16 %v112_v11, %v101_v10  ;;  %v105_v17 = vld [vmem:[%s1628_s1 + $0x278] sm:$0xff]  ;;  %v100_v18 = vld [vmem:[%s1628_s1 + $0x250] sm:$0xff]  ;;  %v111_v19 = vld [vmem:[%s1628_s1 + $0x2a8] sm:$0xff] }
  0x49   :  { %v117_v20 = vld [vmem:[%s1628_s1 + $0x2d8] sm:$0xff]  ;;  %v128_v21 = vld [vmem:[%s1628_s1 + $0x330] sm:$0xff]  ;;  %v123_v22 = vld [vmem:[%s1628_s1 + $0x308] sm:$0xff]  ;;  %v812_v24 = vpack.c.bf16 %v105_v17, %v94_v16  ;;  %v908_v25 = vpack.c.bf16 %v111_v19, %v100_v18 }
  0x4a   :  { %v134_v23 = vld [vmem:[%s1628_s1 + $0x360] sm:$0xff]  ;;  %v814_v26 = vpack.c.bf16 %v128_v21, %v117_v20  ;;  %v116_v28 = vld [vmem:[%s1628_s1 + $0x2d0] sm:$0xff]  ;;  %v127_v29 = vld [vmem:[%s1628_s1 + $0x328] sm:$0xff] }
  0x4b   :  { %v910_v27 = vpack.c.bf16 %v134_v23, %v123_v22  ;;  %v122_v30 = vld [vmem:[%s1628_s1 + $0x300] sm:$0xff]  ;;  %v133_v31 = vld [vmem:[%s1628_s1 + $0x358] sm:$0xff]  ;;  %v139_v32 = vld [vmem:[%s1628_s1 + $0x388] sm:$0xff]  ;;  %v816_v36 = vpack.c.bf16 %v127_v29, %v116_v28  ;;  %v998_v29 = vmov 0.0  }
  0x4c   :  { %v150_v33 = vld [vmem:[%s1628_s1 + $0x3e0] sm:$0xff]  ;;  %v145_v34 = vld [vmem:[%s1628_s1 + $0x3b8] sm:$0xff]  ;;  %v156_v35 = vld [vmem:[%s1628_s1 + $0x410] sm:$0xff]  ;;  %v912_v37 = vpack.c.bf16 %v133_v31, %v122_v30 }
  0x4d   :  { %805 = vmatpush1.bf16.xpose.msra.mxu1 %v804_v0  ;;  %v818_v38 = vpack.c.bf16 %v150_v33, %v139_v32  ;;  %v914_v39 = vpack.c.bf16 %v156_v35, %v145_v34  ;;  %v138_v40 = vld [vmem:[%s1628_s1 + $0x380] sm:$0xff]  ;;  %v149_v41 = vld [vmem:[%s1628_s1 + $0x3d8] sm:$0xff]  ;;  %v144_v42 = vld [vmem:[%s1628_s1 + $0x3b0] sm:$0xff] }
  0x4e   :  { %901 = vmatpush1.bf16.xpose.msra.mxu0 %v900_v1  ;;  %807 = vmatprep.subr.bf16.mxu1 %v806_v2  ;;  %v155_v43 = vld [vmem:[%s1628_s1 + $0x408] sm:$0xff]  ;;  %v161_v44 = vld [vmem:[%s1628_s1 + $0x438] sm:$0xff]  ;;  %v172_v45 = vld [vmem:[%s1628_s1 + $0x490] sm:$0xff]  ;;  %v820_v48 = vpack.c.bf16 %v149_v41, %v138_v40 }
  0x4f   :  { %903 = vmatprep.subr.bf16.mxu0 %v902_v3  ;;  %v167_v46 = vld [vmem:[%s1628_s1 + $0x468] sm:$0xff]  ;;  %v178_v47 = vld [vmem:[%s1628_s1 + $0x4c0] sm:$0xff]  ;;  %v916_v49 = vpack.c.bf16 %v155_v43, %v144_v42  ;;  %v822_v50 = vpack.c.bf16 %v172_v45, %v161_v44  ;;  %v160_v52 = vld [vmem:[%s1628_s1 + $0x430] sm:$0xff] }
  0x50   :  { %v918_v51 = vpack.c.bf16 %v178_v47, %v167_v46  ;;  %v171_v53 = vld [vmem:[%s1628_s1 + $0x488] sm:$0xff]  ;;  %v166_v54 = vld [vmem:[%s1628_s1 + $0x460] sm:$0xff]  ;;  %v177_v55 = vld [vmem:[%s1628_s1 + $0x4b8] sm:$0xff] }
  0x51   :  { %v183_v56 = vld [vmem:[%s1628_s1 + $0x4e8] sm:$0xff]  ;;  %v194_v57 = vld [vmem:[%s1628_s1 + $0x540] sm:$0xff]  ;;  %v189_v58 = vld [vmem:[%s1628_s1 + $0x518] sm:$0xff]  ;;  %v824_v60 = vpack.c.bf16 %v171_v53, %v160_v52  ;;  %v920_v61 = vpack.c.bf16 %v177_v55, %v166_v54 }
  0x52   :  { %v200_v59 = vld [vmem:[%s1628_s1 + $0x570] sm:$0xff]  ;;  %v826_v62 = vpack.c.bf16 %v194_v57, %v183_v56  ;;  %v182_v0 = vld [vmem:[%s1628_s1 + $0x4e0] sm:$0xff]  ;;  %v193_v1 = vld [vmem:[%s1628_s1 + $0x538] sm:$0xff] }
  0x53   :  { %v922_v63 = vpack.c.bf16 %v200_v59, %v189_v58  ;;  %v188_v2 = vld [vmem:[%s1628_s1 + $0x510] sm:$0xff]  ;;  %v199_v3 = vld [vmem:[%s1628_s1 + $0x568] sm:$0xff]  ;;  %v42_v5 = vld [vmem:[%s1628_s1 + $0x80] sm:$0xff]  ;;  %v828_v6 = vpack.c.bf16 %v193_v1, %v182_v0 }
  0x54   :  { %v31_v4 = vld [vmem:[%s1628_s1 + $0x28] sm:$0xff]  ;;  %v924_v7 = vpack.c.bf16 %v199_v3, %v188_v2  ;;  %v30_v9 = vld [vmem:[%s1628_s1 + $0x20] sm:$0xff]  ;;  %v41_v10 = vld [vmem:[%s1628_s1 + $0x78] sm:$0xff] }
  0x55   :  { %809 = vmatpush1.bf16.xpose.msra.mxu1 %v808_v12  ;;  %v830_v8 = vpack.c.bf16 %v42_v5, %v31_v4  ;;  %v36_v11 = vld [vmem:[%s1628_s1 + $0x50] sm:$0xff]  ;;  %v996_v12 = vmov 0.0|0.0   ;;  %v832_v17 = vpack.c.bf16 %v41_v10, %v30_v9  ;;  %v23_v18 = vld [vmem:[%s1627_s0 + $0x40] sm:$0xff]  ;;  %vm1455_vm1 = vmpackc.low %vm209_vm0, %vm209_vm0 }
  0x56   :  { %905 = vmatpush1.bf16.xpose.msra.mxu0 %v904_v13  ;;  %811 = vmatprep.subr.bf16.mxu1 %v810_v14  ;;  %v47_v13 = vld [vmem:[%s1628_s1 + $0xa8] sm:$0xff]  ;;  %v53_v14 = vld [vmem:[%s1628_s1 + $0xd8] sm:$0xff]  ;;  %v17_v16 = vld [vmem:[%s1627_s0 + $0x10] sm:$0xff] }
  0x57   :  { %907 = vmatprep.subr.bf16.mxu0 %v906_v15  ;;  %v64_v15 = vld [vmem:[%s1628_s1 + $0x130] sm:$0xff]  ;;  %v927_v19 = vpack.c.bf16 %v47_v13, %v36_v11  ;;  %v20_v22 = vld [vmem:[%s1627_s0 + $0x28] sm:$0xff]  ;;  %v86_v28 = vld [vmem:[%s1628_s1 + $0x1e0] sm:$0xff] }
  0x58   :  { %v834_v20 = vpack.c.bf16 %v64_v15, %v53_v14  ;;  %v52_v23 = vld [vmem:[%s1628_s1 + $0xd0] sm:$0xff]  ;;  %v74_v33 = vld [vmem:[%s1628_s1 + $0x180] sm:$0xff]  ;;  %v85_v34 = vld [vmem:[%s1628_s1 + $0x1d8] sm:$0xff] }
  0x59   :  { %v80_v35 = vld [vmem:[%s1628_s1 + $0x1b0] sm:$0xff]  ;;  %v107_v43 = vld [vmem:[%s1628_s1 + $0x288] sm:$0xff]  ;;  %v102_v44 = vld [vmem:[%s1628_s1 + $0x260] sm:$0xff] }
  0x5a   :  { %v96_v42 = vld [vmem:[%s1628_s1 + $0x230] sm:$0xff]  ;;  %v113_v45 = vld [vmem:[%s1628_s1 + $0x2b8] sm:$0xff]  ;;  %v119_v46 = vld [vmem:[%s1628_s1 + $0x2e8] sm:$0xff] }
  0x5b   :  { %v130_v47 = vld [vmem:[%s1628_s1 + $0x340] sm:$0xff]  ;;  %v129_v52 = vld [vmem:[%s1628_s1 + $0x338] sm:$0xff]  ;;  %v124_v53 = vld [vmem:[%s1628_s1 + $0x310] sm:$0xff] }
  0x5c   :  { %v135_v54 = vld [vmem:[%s1628_s1 + $0x368] sm:$0xff]  ;;  %v141_v55 = vld [vmem:[%s1628_s1 + $0x398] sm:$0xff]  ;;  %v152_v56 = vld [vmem:[%s1628_s1 + $0x3f0] sm:$0xff] }
  0x5d   :  { %813 = vmatpush1.bf16.xpose.msra.mxu1 %v812_v24  ;;  %v63_v24 = vld [vmem:[%s1628_s1 + $0x128] sm:$0xff]  ;;  %v943_v58 = vpack.c.bf16 %v135_v54, %v124_v53  ;;  %v850_v59 = vpack.c.bf16 %v152_v56, %v141_v55  ;;  %v174_v1 = vld [vmem:[%s1628_s1 + $0x4a0] sm:$0xff]  ;;  %v185_v9 = vld [vmem:[%s1628_s1 + $0x4f8] sm:$0xff] }
  0x5e   :  { %909 = vmatpush1.bf16.xpose.msra.mxu0 %v908_v25  ;;  %815 = vmatprep.subr.bf16.mxu1 %v814_v26  ;;  %v58_v25 = vld [vmem:[%s1628_s1 + $0x100] sm:$0xff]  ;;  %v69_v26 = vld [vmem:[%s1628_s1 + $0x158] sm:$0xff]  ;;  %v836_v30 = vpack.c.bf16 %v63_v24, %v52_v23  ;;  %v163_v0 = vld [vmem:[%s1628_s1 + $0x448] sm:$0xff] }
  0x5f   :  { %911 = vmatprep.subr.bf16.mxu0 %v910_v27  ;;  %v75_v27 = vld [vmem:[%s1628_s1 + $0x188] sm:$0xff]  ;;  %v931_v31 = vpack.c.bf16 %v69_v26, %v58_v25  ;;  %v854_v4 = vpack.c.bf16 %v174_v1, %v163_v0  ;;  %v162_v5 = vld [vmem:[%s1628_s1 + $0x440] sm:$0xff]  ;;  %v196_v10 = vld [vmem:[%s1628_s1 + $0x550] sm:$0xff] }
  0x60   :  { %v838_v32 = vpack.c.bf16 %v86_v28, %v75_v27  ;;  %v858_v14 = vpack.c.bf16 %v196_v10, %v185_v9  ;;  %v184_v15 = vld [vmem:[%s1628_s1 + $0x4f0] sm:$0xff]  ;;  %v696_v23 = vld [vmem:[%s1629_s2] ss:$0 sm:$0xff] }
  0x65   :  { %817 = vmatpush1.bf16.xpose.msra.mxu1 %v816_v36  ;;  %v91_v36 = vld [vmem:[%s1628_s1 + $0x208] sm:$0xff] }
  0x66   :  { %913 = vmatpush1.bf16.xpose.msra.mxu0 %v912_v37  ;;  %819 = vmatprep.subr.bf16.mxu1 %v818_v38  ;;  %v97_v37 = vld [vmem:[%s1628_s1 + $0x238] sm:$0xff]  ;;  %v108_v38 = vld [vmem:[%s1628_s1 + $0x290] sm:$0xff]  ;;  %v935_v40 = vpack.c.bf16 %v91_v36, %v80_v35 }
  0x67   :  { %915 = vmatprep.subr.bf16.mxu0 %v914_v39  ;;  %v840_v39 = vpack.c.bf16 %v85_v34, %v74_v33  ;;  %v842_v41 = vpack.c.bf16 %v108_v38, %v97_v37 }
  0x6d   :  { %821 = vmatpush1.bf16.xpose.msra.mxu1 %v820_v48  ;;  %v844_v48 = vpack.c.bf16 %v107_v43, %v96_v42 }
  0x6e   :  { %917 = vmatpush1.bf16.xpose.msra.mxu0 %v916_v49  ;;  %823 = vmatprep.subr.bf16.mxu1 %v822_v50  ;;  %v939_v49 = vpack.c.bf16 %v113_v45, %v102_v44  ;;  %v846_v50 = vpack.c.bf16 %v130_v47, %v119_v46 }
  0x6f   :  { %919 = vmatprep.subr.bf16.mxu0 %v918_v51  ;;  %v118_v51 = vld [vmem:[%s1628_s1 + $0x2e0] sm:$0xff] }
  0x70   :  { %v848_v57 = vpack.c.bf16 %v129_v52, %v118_v51 }
  0x75   :  { %825 = vmatpush1.bf16.xpose.msra.mxu1 %v824_v60  ;;  %v140_v60 = vld [vmem:[%s1628_s1 + $0x390] sm:$0xff] }
  0x76   :  { %921 = vmatpush1.bf16.xpose.msra.mxu0 %v920_v61  ;;  %827 = vmatprep.subr.bf16.mxu1 %v826_v62  ;;  %v151_v61 = vld [vmem:[%s1628_s1 + $0x3e8] sm:$0xff]  ;;  %v146_v62 = vld [vmem:[%s1628_s1 + $0x3c0] sm:$0xff] }
  0x77   :  { %923 = vmatprep.subr.bf16.mxu0 %v922_v63  ;;  %v157_v63 = vld [vmem:[%s1628_s1 + $0x418] sm:$0xff]  ;;  %v852_v2 = vpack.c.bf16 %v151_v61, %v140_v60 }
  0x78   :  { %v947_v3 = vpack.c.bf16 %v157_v63, %v146_v62 }
  0x7d   :  { %829 = vmatpush1.bf16.xpose.msra.mxu1 %v828_v6  ;;  %v173_v6 = vld [vmem:[%s1628_s1 + $0x498] sm:$0xff] }
  0x7e   :  { %925 = vmatpush1.bf16.xpose.msra.mxu0 %v924_v7  ;;  %831 = vmatprep.subr.bf16.mxu1 %v830_v8  ;;  %v168_v7 = vld [vmem:[%s1628_s1 + $0x470] sm:$0xff]  ;;  %v179_v8 = vld [vmem:[%s1628_s1 + $0x4c8] sm:$0xff]  ;;  %v856_v11 = vpack.c.bf16 %v173_v6, %v162_v5 }
  0x7f   :  { %926 = vmatprep.subr.bf16.mxu0 %v996_v12  ;;  %v951_v13 = vpack.c.bf16 %v179_v8, %v168_v7 }
  0x84   :  { %396 = vmatmul.mubr.f32.vlgmr.msra.gmra.mrb[0].mxu1 %v17_v16  ;;  %v195_v16 = vld [vmem:[%s1628_s1 + $0x548] sm:$0xff] }
  0x85   :  { %833 = vmatpush1.bf16.xpose.msra.mxu1 %v832_v17  ;;  %606 = vmatmul.mubr.f32.vlgmr.msra.gmra.mrb[0].mxu0 %v23_v18  ;;  %v190_v17 = vld [vmem:[%s1628_s1 + $0x520] sm:$0xff]  ;;  %v201_v18 = vld [vmem:[%s1628_s1 + $0x578] sm:$0xff]  ;;  %s999_s1 = smov [#allocation2]  }
  0x86   :  { %929 = vmatpush3.bf16.xpose.msk.msra.mxu0 %vm1455_vm1, %v927_v19  ;;  %835 = vmatprep.subr.bf16.mxu1 %v834_v20  ;;  %v860_v19 = vpack.c.bf16 %v195_v16, %v184_v15  ;;  %v955_v20 = vpack.c.bf16 %v201_v18, %v190_v17  ;;  %s688_s10 = sshll.u32 %s999_s1, 4  ;;  %s689_s10 = int_to_ptr.vmem [resolvable:$true] %s688_s10 }
  0x87   :  { %930 = vmatprep.subr.bf16.mxu0 %v996_v12  ;;  %465 = vmatprep.mubr.f32.mxu1 %v20_v22  ;;  %v19_v22 = vld [vmem:[%s1627_s0 + $0x20] sm:$0xff]  ;;  %s972_s11 = scalar_lea.vmem %s689_s10, 128  ;;  %p977_p1 = scmp.lt.s32.totalorder %s689_s10, %s689_s10 }
  0x88   :  { %763 = vmatprep.mubr.msk.f32.mxu0 %vm997_vm2, %v998_v29  ;;  %p973_p0 = scmp.ne.s32.totalorder %s689_s10, %s972_s11  ;;  %p978_p2 = scmp.lt.s32.totalorder %s972_s11, %s972_s11 }
  0x8a   :  { %p979_p3 = por %p978_p2, %p977_p1 }
  0x8c   :  { %p980_p4 = pnand %p979_p3, %p973_p0 }
  0x8d   :  { %837 = vmatpush1.bf16.xpose.msra.mxu1 %v836_v30 }
  0x8e   :  { %933 = vmatpush3.bf16.xpose.msk.msra.mxu0 %vm1455_vm1, %v931_v31  ;;  %839 = vmatprep.subr.bf16.mxu1 %v838_v32 }
  0x8f   :  { %934 = vmatprep.subr.bf16.mxu0 %v996_v12 }
  0x95   :  { %841 = vmatpush1.bf16.xpose.msra.mxu1 %v840_v39 }
  0x96   :  { %937 = vmatpush3.bf16.xpose.msk.msra.mxu0 %vm1455_vm1, %v935_v40  ;;  %843 = vmatprep.subr.bf16.mxu1 %v842_v41 }
  0x97   :  { %938 = vmatprep.subr.bf16.mxu0 %v996_v12 }
  0x9d   :  { %845 = vmatpush1.bf16.xpose.msra.mxu1 %v844_v48 }
  0x9e   :  { %941 = vmatpush3.bf16.xpose.msk.msra.mxu0 %vm1455_vm1, %v939_v49  ;;  %847 = vmatprep.subr.bf16.mxu1 %v846_v50 }
  0x9f   :  { %942 = vmatprep.subr.bf16.mxu0 %v996_v12 }
  0xa5   :  { %849 = vmatpush1.bf16.xpose.msra.mxu1 %v848_v57 }
  0xa6   :  { %945 = vmatpush3.bf16.xpose.msk.msra.mxu0 %vm1455_vm1, %v943_v58  ;;  %851 = vmatprep.subr.bf16.mxu1 %v850_v59 }
  0xa7   :  { %946 = vmatprep.subr.bf16.mxu0 %v996_v12 }
  0xad   :  { %853 = vmatpush1.bf16.xpose.msra.mxu1 %v852_v2 }
  0xae   :  { %949 = vmatpush3.bf16.xpose.msk.msra.mxu0 %vm1455_vm1, %v947_v3  ;;  %855 = vmatprep.subr.bf16.mxu1 %v854_v4 }
  0xaf   :  { %950 = vmatprep.subr.bf16.mxu0 %v996_v12 }
  0xb5   :  { %857 = vmatpush1.bf16.xpose.msra.mxu1 %v856_v11 }
  0xb6   :  { %953 = vmatpush3.bf16.xpose.msk.msra.mxu0 %vm1455_vm1, %v951_v13  ;;  %859 = vmatprep.subr.bf16.mxu1 %v858_v14 }
  0xb7   :  { %954 = vmatprep.subr.bf16.mxu0 %v996_v12  ;;  %v25_v12 = vld [vmem:[%s1627_s0 + $0x50] sm:$0xff] }
  0xbd   :  { %861 = vmatpush1.bf16.xpose.msra.mxu1 %v860_v19 }
  0xbe   :  { %957 = vmatpush3.bf16.xpose.msk.msra.mxu0 %vm1455_vm1, %v955_v20 }
  0xc4   :  { %466 = vmatmul.mubr.f32.vlgmr.msra.gmra.mrb[0].mxu1 %v19_v22 }
  0xc5   :  { %764 = vmatmul.mubr.msk.f32.vlgmr.msra.gmra.mrb[0].mxu0 %vm209_vm0, %v25_v12 }
 0x197   :  { %v467_v24 = vpop.f32.mrb[0].mxu1 }
 0x198   :  { %v958_v21 = vadd.f32 %v696_v23, %v467_v24  ;;  %v677_v25 = vpop.f32.mrb[0].mxu0  ;;  %v469_v26 = vpop.f32.mrb[1].mxu1 }
 0x199   :  { %v765_v27 = vpop.f32.mrb[1].mxu0 }
 0x19a   :  { %v959_v28 = vadd.f32 %v958_v21, %v677_v25 }
 0x19c   :  { %681 = vst [vmem:[#allocation2] sm:$0xff] %v959_v28 }
 0x19d   :  { %983 = shalt.err (!%p980_p4)
}
 0x19e   :  { %s984_s2 = scalar_lea.hbm %s1630_s3, 128 }
 0x19f   :  { %p985_p5 = scmp.ne.s32.totalorder %s1630_s3, %s984_s2  ;;  %p988_p6 = scmp.lt.u32.totalorder %s984_s2, %s1630_s3 }
 0x1a1   :  { %p990_p7 = pnand %p988_p6, %p985_p5 }
 0x1a3   :  { %993 = shalt.err (!%p990_p7)
}
 0x1a4   :  { %691 = dma.vmem_to_hbm [thread:$0]  %s689_s10, 128, %s1630_s3, [#allocation3]  }
 0x1a5   :  { %994 = dma.done.wait [#allocation3], 128  }
 0x1a6   :  { %995 = vsyncadd [#allocation3], 4294967168 }
 0x1a7   :  { %695 = vsyncpa [#allocation3], 1 }

</bundles_post_ra>
